<compile_context>
chip_gen: v7x
topology: tpu7x:2x2x1
jax: 0.10.0
libtpu: 0.0.40
codegen_flags: <defaults>
</compile_context>

<pallas_src>
import functools

import jax
import jax.numpy as jnp
from jax import lax
from jax.experimental import pallas as pl
from jax.experimental.pallas import tpu as pltpu


def _dvq_kernel(x_ref, cb_ref, cbt_ref, idx_ref, q_ref, loss_ref, *, n_valid):
    # x_ref   : (num, d, TILE_N)  f32   channels-first slab of positions for this tile
    # cb_ref  : (num, K, d)       f32   codebooks            (VMEM-resident, constant index_map)
    # cbt_ref : (num, d, K)       f32   transposed codebooks (VMEM-resident, constant index_map)
    # idx_ref : (num, 1, TILE_N)  int32 nearest codeword per position (lane-dense)
    # q_ref   : (num, d, TILE_N)  f32   gathered codewords (lane-dense)
    # loss_ref: (1, 1, 128)       f32   per-tile partial sum of min distances (lane 0)
    num, d, tile_n = x_ref.shape
    K = cb_ref.shape[1]

    tile_start = pl.program_id(0) * tile_n
    lane = lax.broadcasted_iota(jnp.int32, (1, tile_n), 1)
    valid = (tile_start + lane) < n_valid                              # (1, TILE_N)

    sub_iota = lax.broadcasted_iota(jnp.int32, (K, tile_n), 0)         # codeword id per sublane
    loss_acc = jnp.zeros((1, tile_n), jnp.float32)

    for g in range(num):                                               # num is small & static
        xg = x_ref[g]                                                  # (d, TILE_N)
        cg = cb_ref[g]                                                 # (K, d)
        cg_t = cbt_ref[g]                                              # (d, K)

        # ||c||^2 + ||x||^2 - 2 c @ x   (matches torch.addmm(beta=1, alpha=-2))
        x_sqr = jnp.sum(xg * xg, axis=0, keepdims=True)                # (1, TILE_N)
        c_sqr = jnp.sum(cg * cg, axis=1, keepdims=True)                # (K, 1)
        cx = lax.dot_general(cg, xg, (((1,), (0,)), ((), ())),
                             preferred_element_type=jnp.float32)       # (K, TILE_N)
        dist = (c_sqr + x_sqr) - 2.0 * cx                              # (K, TILE_N)

        # argmin over codewords (first occurrence on ties); reduction runs along sublanes so
        # the result is already a lane-dense row of indices (no transpose needed).
        min_d = jnp.min(dist, axis=0, keepdims=True)                   # (1, TILE_N)
        masked = jnp.where(dist == min_d, sub_iota, K)
        idx = jnp.min(masked, axis=0, keepdims=True)                   # (1, TILE_N) int32

        # gather codewords via one-hot matmul: (d, TILE_N) = c^T @ onehot  (exact selection)
        onehot = (sub_iota == idx).astype(jnp.float32)                 # (K, TILE_N)
        qg = lax.dot_general(cg_t, onehot, (((1,), (0,)), ((), ())),
                             preferred_element_type=jnp.float32)       # (d, TILE_N)

        idx_ref[g] = idx
        q_ref[g] = qg
        # sum_d (x - q)^2 == min distance; clamp at 0 to guard cancellation-induced negatives.
        loss_acc = loss_acc + jnp.maximum(min_d, 0.0)

    partial = jnp.sum(jnp.where(valid, loss_acc, 0.0))                 # scalar (valid lanes only)
    out_lane = lax.broadcasted_iota(jnp.int32, (1, 1, 128), 2)
    loss_ref[...] = jnp.where(out_lane == 0, partial, 0.0)


def dvq_pallas(x_groups, codebooks, codebooks_t, n_valid, tile_n):
    num, d, n_pad = x_groups.shape
    K = codebooks.shape[1]
    n_tiles = n_pad // tile_n

    kernel = functools.partial(_dvq_kernel, n_valid=n_valid)
    return pl.pallas_call(
        kernel,
        out_shape=(
            jax.ShapeDtypeStruct((num, 1, n_pad), jnp.int32),
            jax.ShapeDtypeStruct((num, d, n_pad), jnp.float32),
            jax.ShapeDtypeStruct((n_tiles, 1, 128), jnp.float32),
        ),
        grid=(n_tiles,),
        in_specs=[
            pl.BlockSpec((num, d, tile_n), lambda n: (0, 0, n)),
            pl.BlockSpec((num, K, d), lambda n: (0, 0, 0)),       # codebooks stay VMEM-resident
            pl.BlockSpec((num, d, K), lambda n: (0, 0, 0)),
        ],
        out_specs=(
            pl.BlockSpec((num, 1, tile_n), lambda n: (0, 0, n)),
            pl.BlockSpec((num, d, tile_n), lambda n: (0, 0, n)),
            pl.BlockSpec((1, 1, 128), lambda n: (n, 0, 0)),
        ),
        compiler_params=pltpu.CompilerParams(
            dimension_semantics=("parallel",)),
    )(x_groups, codebooks, codebooks_t)


def dvq_embedding_forward(z_e_x, codebooks, tile_n=1024):
    """Forward pass of DVQEmbedding (ema=False).

    z_e_x:      (bsz, D, h, t) float32  (NCHW, like the PyTorch module)
    codebooks:  (num, K, D // num) float32
    Returns dict(embeddings=(bsz, D, h, t), encodings=(bsz, num, h, t) int32,
                 commitment_loss=scalar).
    """
    bsz, D, h, t = z_e_x.shape
    num, K, d = codebooks.shape
    assert D == num * d
    N = bsz * h * t

    # Tile size: multiple of 128 (lane width), capped by N.  Per-tile VMEM working set is
    # roughly 2 buffers * (2*D + num*K) * tile_n * 4 B plus the (K, tile_n) intermediates,
    # comfortably small at 1024 even for v7x's 64 MiB VMEM.
    tile_n = max(128, min(tile_n, ((N + 127) // 128) * 128))
    n_tiles = (N + tile_n - 1) // tile_n
    n_pad = n_tiles * tile_n

    # channels-first flatten: (bsz, D, h, t) -> (D, N) -> (num, d, N); pad N up to n_pad.
    x_t = jnp.transpose(z_e_x.astype(jnp.float32), (1, 0, 2, 3)).reshape(num, d, N)
    if n_pad != N:
        x_t = jnp.pad(x_t, ((0, 0), (0, 0), (0, n_pad - N)))

    cb = codebooks.astype(jnp.float32)
    cb_t = jnp.transpose(cb, (0, 2, 1))                                # (num, d, K)

    idx, q, loss_part = dvq_pallas(x_t, cb, cb_t, N, tile_n)

    # embeddings: (num, d, N) -> (D, bsz, h, t) -> (bsz, D, h, t)
    embeddings = jnp.transpose(q[:, :, :N].reshape(D, bsz, h, t), (1, 0, 2, 3))
    # encodings:  (num, N) -> (num, bsz, h, t) -> (bsz, num, h, t)
    encodings = jnp.transpose(idx[:, 0, :N].reshape(num, bsz, h, t), (1, 0, 2, 3))
    # commitment loss: sum over groups of 0.25 * mean((z_e_x_g - z_q_x_bar_g)^2)
    commitment_loss = 0.25 * jnp.sum(loss_part) / (N * d)

    return dict(embeddings=embeddings, encodings=encodings,
                commitment_loss=commitment_loss)


if __name__ == "__main__":
    # DVQEmbedding(num=2, K=16, D=8, ema=False); input (bsz=2, D=8, h=8, t=8)
    num, K, D = 2, 16, 8
    d = D // num
    bsz, h, t = 2, 8, 8

    key = jax.random.PRNGKey(0)
    k_x, k_w = jax.random.split(key)
    z_e_x = jax.random.normal(k_x, (bsz, D, h, t), dtype=jnp.float32)
    # nn.Embedding(K, d).weight.uniform_(-1/K, 1/K), one codebook per group
    codebooks = jax.random.uniform(k_w, (num, K, d), dtype=jnp.float32,
                                   minval=-1.0 / K, maxval=1.0 / K)

    out = jax.block_until_ready(dvq_embedding_forward(z_e_x, codebooks))

    # Self-consistency: every output channel-block row must be the codebook row at the
    # returned index, and the loss must match an exact recompute from the outputs.
    emb = out["embeddings"].reshape(bsz, num, d, h, t)
    enc = out["encodings"]
    assert enc.shape == (bsz, num, h, t) and enc.dtype == jnp.int32
    for g in range(num):
        rows = jnp.transpose(emb[:, g], (0, 2, 3, 1)).reshape(-1, d)     # (N, d)
        sel = codebooks[g][enc[:, g].reshape(-1)]
        assert bool(jnp.allclose(rows, sel, rtol=0.0, atol=1e-6))
    ref_loss = 0.25 * jnp.sum(
        jnp.mean((z_e_x.reshape(bsz, num, d, h, t) - emb) ** 2, axis=(0, 2, 3, 4)))
    assert bool(jnp.allclose(out["commitment_loss"], ref_loss, rtol=1e-4, atol=1e-6))

    # Second shape with N not a multiple of 128 to exercise the tail-masking path.
    z2 = jax.random.normal(k_x, (1, D, 5, 7), dtype=jnp.float32)         # N = 35
    out2 = jax.block_until_ready(dvq_embedding_forward(z2, codebooks))
    emb2 = out2["embeddings"].reshape(1, num, d, 5, 7)
    assert out2["encodings"].shape == (1, num, 5, 7)
    for g in range(num):
        rows2 = jnp.transpose(emb2[:, g], (0, 2, 3, 1)).reshape(-1, d)
        sel2 = codebooks[g][out2["encodings"][:, g].reshape(-1)]
        assert bool(jnp.allclose(rows2, sel2, rtol=0.0, atol=1e-6))
    ref_loss2 = 0.25 * jnp.sum(
        jnp.mean((z2.reshape(1, num, d, 5, 7) - emb2) ** 2, axis=(0, 2, 3, 4)))
    assert bool(jnp.allclose(out2["commitment_loss"], ref_loss2, rtol=1e-4, atol=1e-6))

    print("KERNEL_OK")
</pallas_src>

<mosaic_0001>
module attributes {stable_mosaic.version = 11 : i64} {
  func.func @_dvq_kernel(%arg0: i32, %arg1: memref<2x4x128xf32, #tpu.memory_space<vmem>>, %arg2: memref<2x16x4xf32, #tpu.memory_space<vmem>>, %arg3: memref<2x4x16xf32, #tpu.memory_space<vmem>>, %arg4: memref<2x1x128xi32, #tpu.memory_space<vmem>>, %arg5: memref<2x4x128xf32, #tpu.memory_space<vmem>>, %arg6: memref<1x1x128xf32, #tpu.memory_space<vmem>>) attributes {dimension_semantics = [#tpu.dimension_semantics<parallel>], iteration_bounds = array<i64: 1>, scalar_prefetch = 0 : i64, scratch_operands = 0 : i64, tpu.core_type = #tpu.core_type<tc>, window_params = [{transform_indices = @transform_0, window_bounds = array<i64: 2, 4, 128>}, {pipeline_mode = #tpu.pipeline_mode<synchronous>, transform_indices = @transform_1, window_bounds = array<i64: 2, 16, 4>}, {pipeline_mode = #tpu.pipeline_mode<synchronous>, transform_indices = @transform_2, window_bounds = array<i64: 2, 4, 16>}, {transform_indices = @transform_3, window_bounds = array<i64: 2, 1, 128>}, {transform_indices = @transform_4, window_bounds = array<i64: 2, 4, 128>}, {transform_indices = @transform_5, window_bounds = array<i64: 1, 1, 128>}]} {
    %c128_i32 = arith.constant 128 : i32
    %0 = arith.muli %arg0, %c128_i32 : i32
    %1 = tpu.iota {dimensions = array<i32: 1>} : vector<1x128xi32>
    %2 = vector.broadcast %0 : i32 to vector<1x128xi32>
    %3 = arith.addi %2, %1 : vector<1x128xi32>
    %c128_i32_0 = arith.constant 128 : i32
    %4 = vector.broadcast %c128_i32_0 : i32 to vector<1x128xi32>
    %5 = arith.cmpi slt, %3, %4 : vector<1x128xi32>
    %6 = tpu.iota {dimensions = array<i32: 0>} : vector<16x128xi32>
    %cst = arith.constant 0.000000e+00 : f32
    %7 = vector.broadcast %cst : f32 to vector<1x128xf32>
    %c0 = arith.constant 0 : index
    %c0_1 = arith.constant 0 : index
    %c0_2 = arith.constant 0 : index
    %8 = vector.load %arg1[%c0, %c0_1, %c0_2] : memref<2x4x128xf32, #tpu.memory_space<vmem>>, vector<1x4x128xf32>
    %9 = vector.shape_cast %8 : vector<1x4x128xf32> to vector<4x128xf32>
    %c0_3 = arith.constant 0 : index
    %c0_4 = arith.constant 0 : index
    %c0_5 = arith.constant 0 : index
    %10 = vector.load %arg2[%c0_3, %c0_4, %c0_5] : memref<2x16x4xf32, #tpu.memory_space<vmem>>, vector<1x16x4xf32>
    %11 = vector.shape_cast %10 : vector<1x16x4xf32> to vector<16x4xf32>
    %c0_6 = arith.constant 0 : index
    %c0_7 = arith.constant 0 : index
    %c0_8 = arith.constant 0 : index
    %12 = vector.load %arg3[%c0_6, %c0_7, %c0_8] : memref<2x4x16xf32, #tpu.memory_space<vmem>>, vector<1x4x16xf32>
    %13 = vector.shape_cast %12 : vector<1x4x16xf32> to vector<4x16xf32>
    %14 = arith.mulf %9, %9 : vector<4x128xf32>
    %cst_9 = arith.constant dense<0.000000e+00> : vector<128xf32>
    %15 = vector.multi_reduction <add>, %14, %cst_9 [0] : vector<4x128xf32> to vector<128xf32>
    %16 = vector.shape_cast %15 : vector<128xf32> to vector<1x128xf32>
    %17 = arith.mulf %11, %11 : vector<16x4xf32>
    %cst_10 = arith.constant dense<0.000000e+00> : vector<16xf32>
    %18 = vector.multi_reduction <add>, %17, %cst_10 [1] : vector<16x4xf32> to vector<16xf32>
    %19 = vector.shape_cast %18 : vector<16xf32> to vector<16x1xf32>
    %cst_11 = arith.constant dense<0.000000e+00> : vector<16x128xf32>
    %20 = tpu.matmul %11, %9, %cst_11 {dimension_numbers = #tpu.dot_dimension_numbers<[1], [0], [0], [1], [0, 0, 1, 1], [], []>} : vector<16x4xf32>, vector<4x128xf32>, vector<16x128xf32> -> vector<16x128xf32>
    %21 = vector.broadcast %19 : vector<16x1xf32> to vector<16x128xf32>
    %22 = vector.broadcast %16 : vector<1x128xf32> to vector<16x128xf32>
    %23 = arith.addf %21, %22 : vector<16x128xf32>
    %cst_12 = arith.constant 2.000000e+00 : f32
    %24 = vector.broadcast %cst_12 : f32 to vector<16x128xf32>
    %25 = arith.mulf %24, %20 : vector<16x128xf32>
    %26 = arith.subf %23, %25 : vector<16x128xf32>
    %cst_13 = arith.constant dense<0x7F800000> : vector<128xf32>
    %27 = vector.multi_reduction <minimumf>, %26, %cst_13 [0] : vector<16x128xf32> to vector<128xf32>
    %28 = vector.shape_cast %27 : vector<128xf32> to vector<1x128xf32>
    %29 = vector.broadcast %28 : vector<1x128xf32> to vector<16x128xf32>
    %30 = arith.cmpf oeq, %26, %29 : vector<16x128xf32>
    %c16_i32 = arith.constant 16 : i32
    %31 = vector.broadcast %c16_i32 : i32 to vector<16x128xi32>
    %32 = arith.select %30, %6, %31 : vector<16x128xi1>, vector<16x128xi32>
    %cst_14 = arith.constant dense<2147483647> : vector<128xi32>
    %33 = vector.multi_reduction <minsi>, %32, %cst_14 [0] : vector<16x128xi32> to vector<128xi32>
    %34 = vector.shape_cast %33 : vector<128xi32> to vector<1x128xi32>
    %35 = vector.broadcast %34 : vector<1x128xi32> to vector<16x128xi32>
    %36 = arith.cmpi eq, %6, %35 : vector<16x128xi32>
    %37 = arith.extui %36 : vector<16x128xi1> to vector<16x128xi32>
    %38 = arith.sitofp %37 : vector<16x128xi32> to vector<16x128xf32>
    %cst_15 = arith.constant dense<0.000000e+00> : vector<4x128xf32>
    %39 = tpu.matmul %13, %38, %cst_15 {dimension_numbers = #tpu.dot_dimension_numbers<[1], [0], [0], [1], [0, 0, 1, 1], [], []>} : vector<4x16xf32>, vector<16x128xf32>, vector<4x128xf32> -> vector<4x128xf32>
    %c0_16 = arith.constant 0 : index
    %c0_17 = arith.constant 0 : index
    %c0_18 = arith.constant 0 : index
    %40 = vector.load %arg4[%c0_16, %c0_17, %c0_18] : memref<2x1x128xi32, #tpu.memory_space<vmem>>, vector<1x1x128xi32>
    %41 = vector.shape_cast %40 : vector<1x1x128xi32> to vector<1x128xi32>
    %42 = vector.shape_cast %34 : vector<1x128xi32> to vector<1x1x128xi32>
    tpu.vector_store %arg4[%c0_16, %c0_17, %c0_18], %42 {strides = array<i32>} : memref<2x1x128xi32, #tpu.memory_space<vmem>>, vector<1x1x128xi32>,
    %c0_19 = arith.constant 0 : index
    %c0_20 = arith.constant 0 : index
    %c0_21 = arith.constant 0 : index
    %43 = vector.load %arg5[%c0_19, %c0_20, %c0_21] : memref<2x4x128xf32, #tpu.memory_space<vmem>>, vector<1x4x128xf32>
    %44 = vector.shape_cast %43 : vector<1x4x128xf32> to vector<4x128xf32>
    %45 = vector.shape_cast %39 : vector<4x128xf32> to vector<1x4x128xf32>
    tpu.vector_store %arg5[%c0_19, %c0_20, %c0_21], %45 {strides = array<i32>} : memref<2x4x128xf32, #tpu.memory_space<vmem>>, vector<1x4x128xf32>,
    %cst_22 = arith.constant 0.000000e+00 : f32
    %46 = vector.broadcast %cst_22 : f32 to vector<1x128xf32>
    %47 = arith.maximumf %28, %46 : vector<1x128xf32>
    %48 = arith.addf %7, %47 : vector<1x128xf32>
    %c1 = arith.constant 1 : index
    %c0_23 = arith.constant 0 : index
    %c0_24 = arith.constant 0 : index
    %49 = vector.load %arg1[%c1, %c0_23, %c0_24] : memref<2x4x128xf32, #tpu.memory_space<vmem>>, vector<1x4x128xf32>
    %50 = vector.shape_cast %49 : vector<1x4x128xf32> to vector<4x128xf32>
    %c1_25 = arith.constant 1 : index
    %c0_26 = arith.constant 0 : index
    %c0_27 = arith.constant 0 : index
    %51 = vector.load %arg2[%c1_25, %c0_26, %c0_27] : memref<2x16x4xf32, #tpu.memory_space<vmem>>, vector<1x16x4xf32>
    %52 = vector.shape_cast %51 : vector<1x16x4xf32> to vector<16x4xf32>
    %c1_28 = arith.constant 1 : index
    %c0_29 = arith.constant 0 : index
    %c0_30 = arith.constant 0 : index
    %53 = vector.load %arg3[%c1_28, %c0_29, %c0_30] : memref<2x4x16xf32, #tpu.memory_space<vmem>>, vector<1x4x16xf32>
    %54 = vector.shape_cast %53 : vector<1x4x16xf32> to vector<4x16xf32>
    %55 = arith.mulf %50, %50 : vector<4x128xf32>
    %cst_31 = arith.constant dense<0.000000e+00> : vector<128xf32>
    %56 = vector.multi_reduction <add>, %55, %cst_31 [0] : vector<4x128xf32> to vector<128xf32>
    %57 = vector.shape_cast %56 : vector<128xf32> to vector<1x128xf32>
    %58 = arith.mulf %52, %52 : vector<16x4xf32>
    %cst_32 = arith.constant dense<0.000000e+00> : vector<16xf32>
    %59 = vector.multi_reduction <add>, %58, %cst_32 [1] : vector<16x4xf32> to vector<16xf32>
    %60 = vector.shape_cast %59 : vector<16xf32> to vector<16x1xf32>
    %cst_33 = arith.constant dense<0.000000e+00> : vector<16x128xf32>
    %61 = tpu.matmul %52, %50, %cst_33 {dimension_numbers = #tpu.dot_dimension_numbers<[1], [0], [0], [1], [0, 0, 1, 1], [], []>} : vector<16x4xf32>, vector<4x128xf32>, vector<16x128xf32> -> vector<16x128xf32>
    %62 = vector.broadcast %60 : vector<16x1xf32> to vector<16x128xf32>
    %63 = vector.broadcast %57 : vector<1x128xf32> to vector<16x128xf32>
    %64 = arith.addf %62, %63 : vector<16x128xf32>
    %cst_34 = arith.constant 2.000000e+00 : f32
    %65 = vector.broadcast %cst_34 : f32 to vector<16x128xf32>
    %66 = arith.mulf %65, %61 : vector<16x128xf32>
    %67 = arith.subf %64, %66 : vector<16x128xf32>
    %cst_35 = arith.constant dense<0x7F800000> : vector<128xf32>
    %68 = vector.multi_reduction <minimumf>, %67, %cst_35 [0] : vector<16x128xf32> to vector<128xf32>
    %69 = vector.shape_cast %68 : vector<128xf32> to vector<1x128xf32>
    %70 = vector.broadcast %69 : vector<1x128xf32> to vector<16x128xf32>
    %71 = arith.cmpf oeq, %67, %70 : vector<16x128xf32>
    %c16_i32_36 = arith.constant 16 : i32
    %72 = vector.broadcast %c16_i32_36 : i32 to vector<16x128xi32>
    %73 = arith.select %71, %6, %72 : vector<16x128xi1>, vector<16x128xi32>
    %cst_37 = arith.constant dense<2147483647> : vector<128xi32>
    %74 = vector.multi_reduction <minsi>, %73, %cst_37 [0] : vector<16x128xi32> to vector<128xi32>
    %75 = vector.shape_cast %74 : vector<128xi32> to vector<1x128xi32>
    %76 = vector.broadcast %75 : vector<1x128xi32> to vector<16x128xi32>
    %77 = arith.cmpi eq, %6, %76 : vector<16x128xi32>
    %78 = arith.extui %77 : vector<16x128xi1> to vector<16x128xi32>
    %79 = arith.sitofp %78 : vector<16x128xi32> to vector<16x128xf32>
    %cst_38 = arith.constant dense<0.000000e+00> : vector<4x128xf32>
    %80 = tpu.matmul %54, %79, %cst_38 {dimension_numbers = #tpu.dot_dimension_numbers<[1], [0], [0], [1], [0, 0, 1, 1], [], []>} : vector<4x16xf32>, vector<16x128xf32>, vector<4x128xf32> -> vector<4x128xf32>
    %c1_39 = arith.constant 1 : index
    %c0_40 = arith.constant 0 : index
    %c0_41 = arith.constant 0 : index
    %81 = vector.load %arg4[%c1_39, %c0_40, %c0_41] : memref<2x1x128xi32, #tpu.memory_space<vmem>>, vector<1x1x128xi32>
    %82 = vector.shape_cast %81 : vector<1x1x128xi32> to vector<1x128xi32>
    %83 = vector.shape_cast %75 : vector<1x128xi32> to vector<1x1x128xi32>
    tpu.vector_store %arg4[%c1_39, %c0_40, %c0_41], %83 {strides = array<i32>} : memref<2x1x128xi32, #tpu.memory_space<vmem>>, vector<1x1x128xi32>,
    %c1_42 = arith.constant 1 : index
    %c0_43 = arith.constant 0 : index
    %c0_44 = arith.constant 0 : index
    %84 = vector.load %arg5[%c1_42, %c0_43, %c0_44] : memref<2x4x128xf32, #tpu.memory_space<vmem>>, vector<1x4x128xf32>
    %85 = vector.shape_cast %84 : vector<1x4x128xf32> to vector<4x128xf32>
    %86 = vector.shape_cast %80 : vector<4x128xf32> to vector<1x4x128xf32>
    tpu.vector_store %arg5[%c1_42, %c0_43, %c0_44], %86 {strides = array<i32>} : memref<2x4x128xf32, #tpu.memory_space<vmem>>, vector<1x4x128xf32>,
    %cst_45 = arith.constant 0.000000e+00 : f32
    %87 = vector.broadcast %cst_45 : f32 to vector<1x128xf32>
    %88 = arith.maximumf %69, %87 : vector<1x128xf32>
    %89 = arith.addf %48, %88 : vector<1x128xf32>
    %cst_46 = arith.constant 0.000000e+00 : f32
    %90 = vector.broadcast %cst_46 : f32 to vector<1x128xf32>
    %91 = arith.select %5, %89, %90 : vector<1x128xi1>, vector<1x128xf32>
    %92 = vector.shape_cast %91 : vector<1x128xf32> to vector<1x1x128xf32>
    %cst_47 = arith.constant dense<0.000000e+00> : vector<1xf32>
    %93 = vector.multi_reduction <add>, %92, %cst_47 [1, 2] : vector<1x1x128xf32> to vector<1xf32>
    %94 = vector.shape_cast %93 : vector<1xf32> to vector<1x1x1xf32>
    %95 = vector.extract %94[0, 0, 0] : f32 from vector<1x1x1xf32>
    %96 = tpu.iota {dimensions = array<i32: 2>} : vector<1x1x128xi32>
    %c0_i32 = arith.constant 0 : i32
    %97 = vector.broadcast %c0_i32 : i32 to vector<1x1x128xi32>
    %98 = arith.cmpi eq, %96, %97 : vector<1x1x128xi32>
    %cst_48 = arith.constant 0.000000e+00 : f32
    %99 = vector.broadcast %95 : f32 to vector<1x1x128xf32>
    %100 = vector.broadcast %cst_48 : f32 to vector<1x1x128xf32>
    %101 = arith.select %98, %99, %100 : vector<1x1x128xi1>, vector<1x1x128xf32>
    %c0_49 = arith.constant 0 : index
    %c0_50 = arith.constant 0 : index
    %c0_51 = arith.constant 0 : index
    %102 = vector.load %arg6[%c0_49, %c0_50, %c0_51] : memref<1x1x128xf32, #tpu.memory_space<vmem>>, vector<1x1x128xf32>
    tpu.vector_store %arg6[%c0_49, %c0_50, %c0_51], %101 {strides = array<i32>} : memref<1x1x128xf32, #tpu.memory_space<vmem>>, vector<1x1x128xf32>,
    return
  }
  func.func @transform_0(%arg0: i32) -> (i32, i32, i32) {
    %c0_i32 = arith.constant 0 : i32
    %c0_i32_0 = arith.constant 0 : i32
    %c0_i32_1 = arith.constant 0 : i32
    return %c0_i32, %c0_i32_0, %arg0 : i32, i32, i32
  }
  func.func @transform_1(%arg0: i32) -> (i32, i32, i32) {
    %c0_i32 = arith.constant 0 : i32
    %c0_i32_0 = arith.constant 0 : i32
    %c0_i32_1 = arith.constant 0 : i32
    %c0_i32_2 = arith.constant 0 : i32
    return %c0_i32, %c0_i32_0, %c0_i32_1 : i32, i32, i32
  }
  func.func @transform_2(%arg0: i32) -> (i32, i32, i32) {
    %c0_i32 = arith.constant 0 : i32
    %c0_i32_0 = arith.constant 0 : i32
    %c0_i32_1 = arith.constant 0 : i32
    %c0_i32_2 = arith.constant 0 : i32
    return %c0_i32, %c0_i32_0, %c0_i32_1 : i32, i32, i32
  }
  func.func @transform_3(%arg0: i32) -> (i32, i32, i32) {
    %c0_i32 = arith.constant 0 : i32
    %c0_i32_0 = arith.constant 0 : i32
    %c0_i32_1 = arith.constant 0 : i32
    return %c0_i32, %c0_i32_0, %arg0 : i32, i32, i32
  }
  func.func @transform_4(%arg0: i32) -> (i32, i32, i32) {
    %c0_i32 = arith.constant 0 : i32
    %c0_i32_0 = arith.constant 0 : i32
    %c0_i32_1 = arith.constant 0 : i32
    return %c0_i32, %c0_i32_0, %arg0 : i32, i32, i32
  }
  func.func @transform_5(%arg0: i32) -> (i32, i32, i32) {
    %c0_i32 = arith.constant 0 : i32
    %c0_i32_0 = arith.constant 0 : i32
    %c0_i32_1 = arith.constant 0 : i32
    return %arg0, %c0_i32, %c0_i32_0 : i32, i32, i32
  }
}

</mosaic_0001>

<bundles_post_ra>
// kernel: tpu_custom_call.1
= control target key start
LH: loop header
LB: loop body
LE: loop exit
PB: predicated region body
PF: predicated region fallthrough
CT: control target
= control target key end

     0   :  { %11 = vsyncpa [#allocation3], 0  ;;  %vm33_vm0 = vcmask 1043456   ;;  %vm43_vm1 = vcmask 31744   ;;  %s803_s0 = inlined_call_operand.vmem [shape: f32[2,4,128], index: 0, kind: input, shape index: {}]   ;;  %s804_s1 = inlined_call_operand.vmem [shape: f32[2,16,4], index: 1, kind: input, shape index: {}]   ;;  %s805_s2 = inlined_call_operand.vmem [shape: f32[2,4,16], index: 2, kind: input, shape index: {}]   ;;  %s806_s3 = inlined_call_operand.hbm [shape: s32[2,1,128], index: 3, kind: output, shape index: {0}]   ;;  %s807_s4 = inlined_call_operand.hbm [shape: f32[2,4,128], index: 4, kind: output, shape index: {1}]   ;;  %s808_s5 = inlined_call_operand.hbm [shape: f32[1,1,128], index: 5, kind: output, shape index: {2}]  }
   0x1   :  { %v28_v0 = vld [vmem:[%s803_s0] sm:$0xf]  ;;  %v30_v2 = vld [vmem:[%s804_s1 + $0x8] sm:$0xff]  ;;  %v535_v5 = vld [vmem:[%s803_s0 + $0x4] sm:$0xf] }
   0x2   :  { %v29_v1 = vld [vmem:[%s804_s1] sm:$0xff]  ;;  %v32_v3 = vmul.f32 %v28_v0, %v28_v0  ;;  %559 = vmatprep.subr.msk.mxu0 %vm33_vm0, %v28_v0  ;;  %v536_v6 = vld [vmem:[%s804_s1 + $0x10] sm:$0xff]  ;;  %v537_v7 = vld [vmem:[%s804_s1 + $0x18] sm:$0xff]  ;;  %v42_v9 = vmul.f32 %v30_v2, %v30_v2 }
   0x3   :  { %v41_v4 = vmul.f32 %v29_v1, %v29_v1  ;;  %561 = vmatprep.mubr.msk.f32.mxu0 %vm43_vm1, %v29_v1  ;;  %560 = vmatpush3.msk.msra.mxu0 %vm33_vm0, %v28_v0  ;;  %v261_v8 = vmul.f32 %v536_v6, %v536_v6  ;;  %v262_v10 = vmul.f32 %v537_v7, %v537_v7 }
   0x4   :  { %12 = vsyncpa [#allocation5], 0  ;;  %v34_v11 = vsel %vm33_vm0, %v32_v3, 0.0  ;;  %562 = vmatmul.mubr.msk.f32.vlgmr.msra.gmra.mrb[0].mxu0 %vm43_vm1, %v30_v2  ;;  %571 = vmatprep.subr.msk.mxu0 %vm33_vm0, %v535_v5  ;;  %v47_v14 = vsel %vm43_vm1, %v42_v9, 0.0  ;;  %v253_v16 = vmul.f32 %v535_v5, %v535_v5  ;;  %v672_v18 = vmov 0.0|0.0   ;;  %s676_s7 = smov [#allocation2]  }
   0x5   :  { %v44_v12 = vsel %vm43_vm1, %v41_v4, 0.0  ;;  %572 = vmatpush3.msk.msra.mxu0 %vm33_vm0, %v535_v5  ;;  %573 = vmatprep.mubr.msk.f32.mxu0 %vm43_vm1, %v536_v6  ;;  %v263_v13 = vsel %vm43_vm1, %v261_v8, 0.0  ;;  %v266_v15 = vsel %vm43_vm1, %v262_v10, 0.0  ;;  %vm673_vm2 = vmmov 0   ;;  %s487_s8 = sshll.u32 %s676_s7, 4  ;;  %s488_s8 = int_to_ptr.vmem [resolvable:$true] %s487_s8 }
   0x6   :  { %45 = vadd.xlane.f32.xlu0 %v44_v12  ;;  %264 = vadd.xlane.f32.xlu1 %v263_v13  ;;  %v254_v17 = vsel %vm33_vm0, %v253_v16, 0.0  ;;  %v674_v19 = vmov 0.0   ;;  %v35_v20 = vrot.slane %v34_v11, 4  ;;  %v20_v54 = vlaneseq  ;;  %s602_s9 = scalar_lea.vmem %s488_s8, 32  ;;  %p607_p1 = scmp.lt.s32.totalorder %s488_s8, %s488_s8 }
   0x7   :  { %583 = vmatprep.subr.bf16.mxu1 %v672_v18  ;;  %568 = vmatprep.mubr.msk.f32.mxu1 %vm673_vm2, %v674_v19  ;;  %v255_v22 = vrot.slane %v254_v17, 4  ;;  %vm467_vm8 = vcmask 1040384   ;;  %p603_p0 = scmp.ne.s32.totalorder %s488_s8, %s602_s9  ;;  %p608_p2 = scmp.lt.s32.totalorder %s602_s9, %s602_s9 }
   0x8   :  { %574 = vmatmul.mubr.msk.f32.vlgmr.msra.gmra.mrb[2].mxu0 %vm43_vm1, %v537_v7  ;;  %v36_v21 = vadd.f32 %v35_v20, %v34_v11  ;;  %v26_v59 = vshrl.u32 %v20_v54, 7 }
   0x9   :  { %v256_v24 = vadd.f32 %v255_v22, %v254_v17  ;;  %p609_p3 = por %p608_p2, %p607_p1 }
   0xa   :  { %48 = vadd.xlane.f32.xlu0 %v47_v14  ;;  %267 = vadd.xlane.f32.xlu1 %v266_v15  ;;  %v37_v23 = vrot.slane %v36_v21, 2  ;;  %v27_v0 = vadd.s32 8, %v26_v59 }
   0xb   :  { %v257_v26 = vrot.slane %v256_v24, 2  ;;  %p610_p4 = pnand %p609_p3, %p603_p0 }
   0xc   :  { %v38_v25 = vadd.f32 %v37_v23, %v36_v21 }
   0xd   :  { %v258_v29 = vadd.f32 %v257_v26, %v256_v24 }
   0xe   :  { %v39_v28 = vrot.slane %v38_v25, 1 }
   0xf   :  { %v259_v33 = vrot.slane %v258_v29, 1 }
  0x10   :  { %v40_v32 = vadd.f32 %v39_v28, %v38_v25  ;;  %v675_v28 = vmov 1.0|1.0  }
  0x11   :  { %v260_v37 = vadd.f32 %v259_v33, %v258_v29  ;;  %v31_v29 = vld [vmem:[%s805_s2] sm:$0xf] }
  0x93   :  { %v46_v27 = vpop.xlane.xlu0 %45  ;;  %v265_v30 = vpop.xlane.xlu1 %264 }
  0x94   :  { %v134_v40 = vadd.f32 %v46_v27, %v40_v32  ;;  %v353_v48 = vadd.f32 %v265_v30, %v260_v37 }
  0x97   :  { %v49_v31 = vpop.xlane.xlu0 %48  ;;  %v268_v36 = vpop.xlane.xlu1 %267 }
  0x98   :  { %v135_v34 = vadd.f32 %v49_v31, %v40_v32  ;;  %v354_v43 = vadd.f32 %v268_v36, %v260_v37  ;;  %v538_v31 = vld [vmem:[%s805_s2 + $0x4] sm:$0xf] }
  0xd7   :  { %v563_v35 = vpop.f32.mrb[0].mxu0 }
  0xd8   :  { %v137_v38 = vmul.f32 2.0, %v563_v35  ;;  %v125_v39 = vpop.f32.mrb[1].mxu0 }
  0xd9   :  { %v136_v41 = vmul.f32 2.0, %v125_v39 }
  0xda   :  { %v139_v42 = vsub.f32 %v135_v34, %v137_v38 }
  0xdb   :  { %v138_v44 = vsub.f32 %v134_v40, %v136_v41  ;;  %v575_v45 = vpop.f32.mrb[2].mxu0 }
  0xdc   :  { %v356_v46 = vmul.f32 2.0, %v575_v45  ;;  %v344_v47 = vpop.f32.mrb[3].mxu0 }
  0xdd   :  { %v140_v49 = vmin.f32 %v138_v44, %v139_v42  ;;  %v355_v50 = vmul.f32 2.0, %v344_v47 }
  0xde   :  { %v358_v51 = vsub.f32 %v354_v43, %v356_v46 }
  0xdf   :  { %v141_v52 = vrot.slane %v140_v49, 4  ;;  %v357_v53 = vsub.f32 %v353_v48, %v355_v50 }
  0xe1   :  { %v142_v55 = vmin.f32 %v140_v49, %v141_v52  ;;  %v359_v56 = vmin.f32 %v357_v53, %v358_v51 }
  0xe3   :  { %v143_v57 = vrot.slane %v142_v55, 2  ;;  %v360_v58 = vrot.slane %v359_v56, 4 }
  0xe5   :  { %v144_v60 = vmin.f32 %v142_v55, %v143_v57  ;;  %v361_v61 = vmin.f32 %v359_v56, %v360_v58 }
  0xe7   :  { %v145_v62 = vrot.slane %v144_v60, 1  ;;  %v362_v63 = vrot.slane %v361_v61, 2 }
  0xe9   :  { %v146_v1 = vmin.f32 %v144_v60, %v145_v62  ;;  %v363_v2 = vmin.f32 %v361_v61, %v362_v63 }
  0xeb   :  { %vm147_vm3 = vcmp.eq.f32.partialorder %v138_v44, %v146_v1  ;;  %vm148_vm4 = vcmp.eq.f32.partialorder %v139_v42, %v146_v1  ;;  %v364_v3 = vrot.slane %v363_v2, 1  ;;  %v244_v8 = vmax.f32 %v146_v1, 0.0 }
  0xec   :  { %v149_v4 = vsel %vm147_vm3, %v26_v59, 16  ;;  %v150_v5 = vsel %vm148_vm4, %v27_v0, 16  ;;  %vm168_vm3 = vcmask 130048  }
  0xed   :  { %vm151_vm5 = vcmp.lt.s32.totalorder %v149_v4, %v150_v5  ;;  %v365_v6 = vmin.f32 %v363_v2, %v364_v3 }
  0xee   :  { %v152_v7 = vsel %vm151_vm5, %v149_v4, %v150_v5 }
  0xef   :  { %v153_v9 = vrot.slane %v152_v7, 4  ;;  %vm366_vm6 = vcmp.eq.f32.partialorder %v357_v53, %v365_v6  ;;  %vm367_vm7 = vcmp.eq.f32.partialorder %v358_v51, %v365_v6  ;;  %v464_v10 = vmax.f32 %v365_v6, 0.0 }
  0xf0   :  { %v368_v11 = vsel %vm366_vm6, %v26_v59, 16  ;;  %v369_v12 = vsel %vm367_vm7, %v27_v0, 16 }
  0xf1   :  { %vm154_vm9 = vcmp.lt.s32.totalorder %v152_v7, %v153_v9  ;;  %vm370_vm10 = vcmp.lt.s32.totalorder %v368_v11, %v369_v12  ;;  %v465_v13 = vadd.f32 %v464_v10, %v244_v8 }
  0xf2   :  { %v371_v14 = vsel %vm370_vm10, %v368_v11, %v369_v12  ;;  %v155_v15 = vsel %vm154_vm9, %v152_v7, %v153_v9 }
  0xf3   :  { %v372_v16 = vrot.slane %v371_v14, 4  ;;  %v468_v17 = vsel %vm467_vm8, %v465_v13, 0.0  ;;  %v156_v20 = vrot.slane %v155_v15, 2 }
  0xf4   :  { %469 = vadd.xlane.f32.xlu0 %v468_v17 }
  0xf5   :  { %vm373_vm11 = vcmp.lt.s32.totalorder %v371_v14, %v372_v16  ;;  %vm157_vm12 = vcmp.lt.s32.totalorder %v155_v15, %v156_v20 }
  0xf6   :  { %v374_v21 = vsel %vm373_vm11, %v371_v14, %v372_v16  ;;  %v158_v22 = vsel %vm157_vm12, %v155_v15, %v156_v20 }
  0xf7   :  { %v375_v23 = vrot.slane %v374_v21, 2  ;;  %v159_v24 = vrot.slane %v158_v22, 1 }
  0xf9   :  { %vm376_vm13 = vcmp.lt.s32.totalorder %v374_v21, %v375_v23  ;;  %vm160_vm14 = vcmp.lt.s32.totalorder %v158_v22, %v159_v24 }
  0xfa   :  { %v161_v25 = vsel %vm160_vm14, %v158_v22, %v159_v24  ;;  %v377_v26 = vsel %vm376_vm13, %v374_v21, %v375_v23 }
  0xfb   :  { %vm162_vm15 = vcmp.eq.s32.totalorder %v26_v59, %v161_v25  ;;  %vm163_vm0 = vcmp.eq.s32.totalorder %v27_v0, %v161_v25  ;;  %242 = vst [vmem:[#allocation2] sm:$0x1] %v161_v25  ;;  %v378_v27 = vrot.slane %v377_v26, 1 }
  0xfc   :  { %vm584_vm1 = vmpackc.low %vm163_vm0, %vm162_vm15 }
  0xfd   :  { %585 = vmatpush3.bf16.msk.msra.mxu1 %vm584_vm1, %v675_v28  ;;  %vm379_vm4 = vcmp.lt.s32.totalorder %v377_v26, %v378_v27 }
  0xfe   :  { %586 = vmatprep.subr.bf16.mxu1 %v672_v18  ;;  %v380_v30 = vsel %vm379_vm4, %v377_v26, %v378_v27 }
  0xff   :  { %vm381_vm5 = vcmp.eq.s32.totalorder %v26_v59, %v380_v30  ;;  %vm382_vm6 = vcmp.eq.s32.totalorder %v27_v0, %v380_v30  ;;  %461 = vst [vmem:[#allocation2 + $0x1] sm:$0x1] %v380_v30 }
 0x100   :  { %569 = vmatmul.mubr.msk.f32.vlgmr.msra.gmra.mrb[0].mxu1 %vm168_vm3, %v31_v29  ;;  %vm587_vm7 = vmpackc.low %vm382_vm6, %vm381_vm5 }
 0x101   :  { %588 = vmatpush3.bf16.msk.msra.mxu1 %vm587_vm7, %v675_v28  ;;  %580 = vmatprep.mubr.msk.f32.mxu1 %vm673_vm2, %v674_v19 }
 0x104   :  { %581 = vmatmul.mubr.msk.f32.vlgmr.msra.gmra.mrb[2].mxu1 %vm168_vm3, %v538_v31 }
 0x105   :  { %613 = shalt.err (!%p610_p4)
}
 0x106   :  { %s614_s12 = scalar_lea.hbm %s806_s3, 32 }
 0x107   :  { %p615_p5 = scmp.ne.s32.totalorder %s806_s3, %s614_s12  ;;  %p618_p6 = scmp.lt.u32.totalorder %s614_s12, %s806_s3 }
 0x109   :  { %p620_p7 = pnand %p618_p6, %p615_p5 }
 0x10b   :  { %623 = shalt.err (!%p620_p7)
}
 0x10c   :  { %s677_s16 = smov 16   ;;  %s678_s17 = smov 1   ;;  %v21_v37 = vand.u32 127, %v20_v54 }
 0x10d   :  { %493 = dma.vmem_to_hbm [thread:$0]  %s488_s8, 32, %s806_s3, [#allocation3], %s677_s16, %s677_s16, %s678_s17  }
 0x10e   :  { %vm478_vm2 = vcmp.eq.s32.totalorder %v21_v37, 0  ;;  %s679_s21 = smov [#allocation4]   ;;  %s680_s3 = smov [#allocation6]  }
 0x10f   :  { %s499_s22 = sshll.u32 %s679_s21, 4  ;;  %s512_s23 = sshll.u32 %s680_s3, 4  ;;  %s500_s22 = int_to_ptr.vmem [resolvable:$true] %s499_s22  ;;  %s771_s23 = int_to_ptr.vmem [resolvable:$true] %s512_s23 }
 0x110   :  { %s624_s24 = scalar_lea.vmem %s500_s22, 128  ;;  %p629_p9 = scmp.lt.s32.totalorder %s500_s22, %s500_s22 }
 0x111   :  { %p625_p8 = scmp.ne.s32.totalorder %s500_s22, %s624_s24  ;;  %p630_p10 = scmp.lt.s32.totalorder %s624_s24, %s624_s24 }
 0x113   :  { %p631_p11 = por %p630_p10, %p629_p9 }
 0x115   :  { %p632_p12 = pnand %p631_p11, %p625_p8 }
 0x181   :  { %v470_v18 = vpop.xlane.xlu0 %469 }
 0x182   :  { %v471_v19 = vrot.slane %v470_v18, 4 }
 0x184   :  { %v472_v32 = vadd.f32 %v471_v19, %v470_v18 }
 0x186   :  { %v473_v33 = vrot.slane %v472_v32, 2 }
 0x188   :  { %v474_v34 = vadd.f32 %v473_v33, %v472_v32 }
 0x18a   :  { %v475_v35 = vrot.slane %v474_v34, 1 }
 0x18c   :  { %v476_v36 = vadd.f32 %v475_v35, %v474_v34 }
 0x18e   :  { %589 = vpush %v476_v36 }
 0x1bf   :  { %s590_s20 = spop %589 }
 0x1c0   :  { %v479_v38 = vstv %s590_s20 }
 0x1c1   :  { %v480_v39 = vsel %vm478_vm2, %v479_v38, 0.0 }
 0x1c2   :  { %481 = vst [vmem:[#allocation6] sm:$0x1] %v480_v39 }
 0x1d3   :  { %v238_v40 = vpop.f32.mrb[0].mxu1 }
 0x1d4   :  { %243 = vst [vmem:[#allocation4] sm:$0xf] %v238_v40  ;;  %v570_v41 = vpop.f32.mrb[1].mxu1 }
 0x1d7   :  { %v456_v42 = vpop.f32.mrb[2].mxu1 }
 0x1d8   :  { %463 = vst [vmem:[#allocation4 + $0x4] sm:$0xf] %v456_v42  ;;  %v582_v43 = vpop.f32.mrb[3].mxu1 }
 0x1d9   :  { %635 = shalt.err (!%p632_p12)
}
 0x1da   :  { %s636_s27 = scalar_lea.hbm %s807_s4, 128 }
 0x1db   :  { %p637_p13 = scmp.ne.s32.totalorder %s807_s4, %s636_s27  ;;  %p640_p0 = scmp.lt.u32.totalorder %s636_s27, %s807_s4 }
 0x1dd   :  { %p642_p1 = pnand %p640_p0, %p637_p13 }
 0x1df   :  { %645 = shalt.err (!%p642_p1)
}
 0x1e0   :  { %s681_s30 = smov 64   ;;  %s682_s6 = smov 4  }
 0x1e1   :  { %505 = dma.vmem_to_hbm [thread:$0]  %s500_s22, 128, %s807_s4, [#allocation5], %s681_s30, %s681_s30, %s682_s6  }
 0x1e2   :  { %s646_s9 = scalar_lea.vmem %s771_s23, 16  ;;  %s650_s10 = scalar_lea.vmem %s771_s23, 32 }
 0x1e3   :  { %p647_p2 = scmp.ne.s32.totalorder %s771_s23, %s646_s9  ;;  %p651_p3 = scmp.lt.s32.totalorder %s771_s23, %s771_s23 }
 0x1e4   :  { %p652_p4 = scmp.lt.s32.totalorder %s650_s10, %s646_s9 }
 0x1e6   :  { %p653_p5 = por %p652_p4, %p651_p3 }
 0x1e8   :  { %p654_p6 = pnand %p653_p5, %p647_p2 }
 0x1ea   :  { %657 = shalt.err (!%p654_p6)
}
 0x1eb   :  { %s658_s13 = scalar_lea.hbm %s808_s5, 16 }
 0x1ec   :  { %p659_p7 = scmp.ne.s32.totalorder %s808_s5, %s658_s13  ;;  %p662_p8 = scmp.lt.u32.totalorder %s658_s13, %s808_s5 }
 0x1ee   :  { %p664_p9 = pnand %p662_p8, %p659_p7 }
 0x1f0   :  { %667 = shalt.err (!%p664_p9)
}
 0x1f1   :  { %515 = dma.vmem_to_hbm [thread:$0]  %s771_s23, 16, %s808_s5, [#allocation5]  }
 0x1f2   :  { %668 = dma.done.wait [#allocation3], 32  }
 0x1f3   :  { %669 = vsyncadd [#allocation3], 4294967264 }
 0x1f4   :  { %670 = dma.done.wait [#allocation5], 144  }
 0x1f5   :  { %671 = vsyncadd [#allocation5], 4294967152 }
 0x1f6   :  { %525 = vsyncpa [#allocation3], 1 }
 0x1f7   :  { %526 = vsyncpa [#allocation5], 1 }

</bundles_post_ra>
